<compile_context>
chip_gen: v6e
topology: v6e:2x2x1
jax: 0.10.0
libtpu: 0.0.40
codegen_flags: <defaults>
</compile_context>

<pallas_src>
import functools

import jax
import jax.numpy as jnp
from jax import lax
from jax.experimental import pallas as pl
from jax.experimental.pallas import tpu as pltpu

_LANE = 128      # last-dim tiling unit (vreg lanes)
_SUBLANE = 8     # second-to-last-dim tiling unit (vreg sublanes)
_BN_EPS = 1e-5   # PyTorch BatchNorm1d default


def _ceil_to(n, m):
    return ((n + m - 1) // m) * m


# ----------------------------------------------------------------------------
# Fused kernel: all DenseLayers + softmax, everything resident in VMEM.
# ----------------------------------------------------------------------------
def _fused_classifier_kernel(*refs, layer_has_bn, batch, n_classes):
    """refs = (x_ref, <per-layer w,b[,gamma,beta]...>, o_ref), all VMEM-resident.

    layer_has_bn: static tuple[bool] describing the layer stack.
    batch / n_classes: the *real* (unpadded) sizes, used for masking.
    """
    x_ref = refs[0]
    o_ref = refs[-1]
    param_refs = refs[1:-1]

    y = x_ref[...]                                   # f32 (B_pad, F_pad)
    b_pad = y.shape[0]
    # Padded batch rows must not pollute BatchNorm batch statistics.
    row_valid = lax.broadcasted_iota(jnp.int32, (b_pad, 1), 0) < batch
    inv_n = 1.0 / float(batch)

    idx = 0
    for has_bn in layer_has_bn:
        w = param_refs[idx][...]
        b = param_refs[idx + 1][...]
        idx += 2
        # Linear (MXU, f32 accumulate) + ReLU
        y = jnp.dot(y, w, preferred_element_type=jnp.float32) + b
        y = jnp.maximum(y, 0.0)
        if has_bn:
            gamma = param_refs[idx][...]
            beta = param_refs[idx + 1][...]
            idx += 2
            # Training-mode BatchNorm1d: biased batch stats over real rows only,
            # one-pass variance E[y^2] - mean^2.
            ym = jnp.where(row_valid, y, 0.0)
            mean = jnp.sum(ym, axis=0, keepdims=True) * inv_n
            ex2 = jnp.sum(ym * ym, axis=0, keepdims=True) * inv_n
            var = jnp.maximum(ex2 - mean * mean, 0.0)
            y = (y - mean) * lax.rsqrt(var + _BN_EPS)
            y = y * gamma + beta

    # Softmax over the real class columns (padded class columns masked out).
    c_pad = y.shape[1]
    col_valid = lax.broadcasted_iota(jnp.int32, (1, c_pad), 1) < n_classes
    logits = jnp.where(col_valid, y, -1e30)
    m = jnp.max(logits, axis=-1, keepdims=True)
    e = jnp.exp(logits - m)
    denom = jnp.sum(e, axis=-1, keepdims=True)
    # Exact divide (not the EUP approximate reciprocal) so softmax rows sum to
    # 1 within f32 rounding; cost is negligible for this kernel.
    o_ref[...] = (e / denom).astype(o_ref.dtype)


# ----------------------------------------------------------------------------
# Parameter construction (deterministic; mirrors Classifier.__init__ shapes,
# padded to lane-dense layouts at init time).
# ----------------------------------------------------------------------------
def init_classifier_params(key, n_in, n_hidden, widths, n_classes):
    """Mirrors: net = [DenseLayer(n_in, widths[0])] ;
                widths.append(n_classes) ;
                for i in range(n_hidden): net += [DenseLayer(widths[i], widths[i+1], bn=True)]

    Weights are stored as (in, out) so the kernel computes y = x @ W + b
    (== PyTorch's x @ W_torch.T). All feature dims are zero-padded to
    multiples of 128 so every kernel tile is lane-dense.
    """
    widths = list(widths) + [n_classes]
    dims_in = [n_in] + widths[:n_hidden]
    dims_out = widths[: n_hidden + 1]
    params = []
    for li, (d_in, d_out) in enumerate(zip(dims_in, dims_out)):
        key, kw, kb = jax.random.split(key, 3)
        scale = 1.0 / jnp.sqrt(jnp.float32(d_in))
        w = jax.random.uniform(kw, (d_in, d_out), jnp.float32, -scale, scale)
        b = jax.random.uniform(kb, (1, d_out), jnp.float32, -scale, scale)

        d_in_p = _ceil_to(d_in, _LANE)
        d_out_p = _ceil_to(d_out, _LANE)
        w_p = jnp.zeros((d_in_p, d_out_p), jnp.float32).at[:d_in, :d_out].set(w)
        b_p = jnp.zeros((1, d_out_p), jnp.float32).at[:, :d_out].set(b)
        gamma = jnp.ones((1, d_out_p), jnp.float32)   # BatchNorm1d default weight
        beta = jnp.zeros((1, d_out_p), jnp.float32)   # BatchNorm1d default bias
        apply_bn = li > 0                             # first DenseLayer has no BN
        params.append((w_p, b_p, gamma, beta, apply_bn))
    return params


# ----------------------------------------------------------------------------
# Forward wrapper: one fused pallas_call for the entire network.
# ----------------------------------------------------------------------------
def classifier_forward(params, x, *, n_classes):
    batch, n_in = x.shape
    b_pad = _ceil_to(batch, _SUBLANE)
    in_pad = params[0][0].shape[0]          # padded n_in of the first weight
    c_pad = params[-1][0].shape[1]          # padded class dim of the last weight

    # Zero-pad the activation to (sublane, lane)-aligned shape.
    x_p = jnp.zeros((b_pad, in_pad), x.dtype).at[:batch, :n_in].set(x)

    flat_inputs = [x_p]
    layer_has_bn = []
    for (w, b, gamma, beta, apply_bn) in params:
        flat_inputs += [w, b]
        if apply_bn:                        # skip unused gamma/beta for no-BN layer
            flat_inputs += [gamma, beta]
        layer_has_bn.append(apply_bn)

    vmem = pl.BlockSpec(memory_space=pltpu.MemorySpace.VMEM)
    out_p = pl.pallas_call(
        functools.partial(
            _fused_classifier_kernel,
            layer_has_bn=tuple(layer_has_bn),
            batch=batch,
            n_classes=n_classes,
        ),
        out_shape=jax.ShapeDtypeStruct((b_pad, c_pad), x.dtype),
        in_specs=[vmem] * len(flat_inputs),
        out_specs=vmem,
    )(*flat_inputs)
    return out_p[:batch, :n_classes]


# ----------------------------------------------------------------------------
if __name__ == "__main__":
    # Small, forward-consistent shapes.
    batch = 8
    n_in = 32
    n_hidden = 2
    widths = [64, 32]          # len(widths) == n_hidden, as __init__ implies
    n_classes = 8

    key = jax.random.PRNGKey(0)
    key, kx = jax.random.split(key)
    x = jax.random.normal(kx, (batch, n_in), jnp.float32)

    params = init_classifier_params(key, n_in, n_hidden, widths, n_classes)

    out = classifier_forward(params, x, n_classes=n_classes)
    out = jax.block_until_ready(out)

    assert out.shape == (batch, n_classes)
    assert bool(jnp.all(jnp.isfinite(out)))
    # softmax rows must sum to 1 (exact divide in kernel => f32 rounding only)
    assert bool(jnp.allclose(jnp.sum(out, axis=-1), 1.0, atol=1e-5))
    print("KERNEL_OK")
</pallas_src>

<mosaic_0001>
module attributes {stable_mosaic.version = 11 : i64} {
  func.func @_fused_classifier_kernel(%arg0: memref<8x128xf32, #tpu.memory_space<vmem>>, %arg1: memref<128x128xf32, #tpu.memory_space<vmem>>, %arg2: memref<1x128xf32, #tpu.memory_space<vmem>>, %arg3: memref<128x128xf32, #tpu.memory_space<vmem>>, %arg4: memref<1x128xf32, #tpu.memory_space<vmem>>, %arg5: memref<1x128xf32, #tpu.memory_space<vmem>>, %arg6: memref<1x128xf32, #tpu.memory_space<vmem>>, %arg7: memref<128x128xf32, #tpu.memory_space<vmem>>, %arg8: memref<1x128xf32, #tpu.memory_space<vmem>>, %arg9: memref<1x128xf32, #tpu.memory_space<vmem>>, %arg10: memref<1x128xf32, #tpu.memory_space<vmem>>, %arg11: memref<8x128xf32, #tpu.memory_space<vmem>>) attributes {dimension_semantics = [], scalar_prefetch = 0 : i64, scratch_operands = 0 : i64, tpu.core_type = #tpu.core_type<tc>} {
    %c0 = arith.constant 0 : index
    %c0_0 = arith.constant 0 : index
    %0 = vector.load %arg0[%c0, %c0_0] : memref<8x128xf32, #tpu.memory_space<vmem>>, vector<8x128xf32>
    %1 = tpu.iota {dimensions = array<i32: 0>} : vector<8x1xi32>
    %c8_i32 = arith.constant 8 : i32
    %2 = vector.broadcast %c8_i32 : i32 to vector<8x1xi32>
    %3 = arith.cmpi slt, %1, %2 : vector<8x1xi32>
    %c0_1 = arith.constant 0 : index
    %c0_2 = arith.constant 0 : index
    %4 = vector.load %arg1[%c0_1, %c0_2] : memref<128x128xf32, #tpu.memory_space<vmem>>, vector<128x128xf32>
    %c0_3 = arith.constant 0 : index
    %c0_4 = arith.constant 0 : index
    %5 = vector.load %arg2[%c0_3, %c0_4] : memref<1x128xf32, #tpu.memory_space<vmem>>, vector<1x128xf32>
    %cst = arith.constant dense<0.000000e+00> : vector<8x128xf32>
    %6 = tpu.matmul %0, %4, %cst {dimension_numbers = #tpu.dot_dimension_numbers<[1], [0], [0], [1], [0, 0, 1, 1], [], []>} : vector<8x128xf32>, vector<128x128xf32>, vector<8x128xf32> -> vector<8x128xf32>
    %7 = vector.broadcast %5 : vector<1x128xf32> to vector<8x128xf32>
    %8 = arith.addf %6, %7 : vector<8x128xf32>
    %cst_5 = arith.constant 0.000000e+00 : f32
    %9 = vector.broadcast %cst_5 : f32 to vector<8x128xf32>
    %10 = arith.maximumf %8, %9 : vector<8x128xf32>
    %c0_6 = arith.constant 0 : index
    %c0_7 = arith.constant 0 : index
    %11 = vector.load %arg3[%c0_6, %c0_7] : memref<128x128xf32, #tpu.memory_space<vmem>>, vector<128x128xf32>
    %c0_8 = arith.constant 0 : index
    %c0_9 = arith.constant 0 : index
    %12 = vector.load %arg4[%c0_8, %c0_9] : memref<1x128xf32, #tpu.memory_space<vmem>>, vector<1x128xf32>
    %cst_10 = arith.constant dense<0.000000e+00> : vector<8x128xf32>
    %13 = tpu.matmul %10, %11, %cst_10 {dimension_numbers = #tpu.dot_dimension_numbers<[1], [0], [0], [1], [0, 0, 1, 1], [], []>} : vector<8x128xf32>, vector<128x128xf32>, vector<8x128xf32> -> vector<8x128xf32>
    %14 = vector.broadcast %12 : vector<1x128xf32> to vector<8x128xf32>
    %15 = arith.addf %13, %14 : vector<8x128xf32>
    %cst_11 = arith.constant 0.000000e+00 : f32
    %16 = vector.broadcast %cst_11 : f32 to vector<8x128xf32>
    %17 = arith.maximumf %15, %16 : vector<8x128xf32>
    %c0_12 = arith.constant 0 : index
    %c0_13 = arith.constant 0 : index
    %18 = vector.load %arg5[%c0_12, %c0_13] : memref<1x128xf32, #tpu.memory_space<vmem>>, vector<1x128xf32>
    %c0_14 = arith.constant 0 : index
    %c0_15 = arith.constant 0 : index
    %19 = vector.load %arg6[%c0_14, %c0_15] : memref<1x128xf32, #tpu.memory_space<vmem>>, vector<1x128xf32>
    %cst_16 = arith.constant 0.000000e+00 : f32
    %20 = vector.shape_cast %3 : vector<8x1xi1> to vector<8x1xi1>
    %21 = vector.broadcast %20 : vector<8x1xi1> to vector<8x128xi1>
    %22 = vector.broadcast %cst_16 : f32 to vector<8x128xf32>
    %23 = arith.select %21, %17, %22 : vector<8x128xi1>, vector<8x128xf32>
    %cst_17 = arith.constant dense<0.000000e+00> : vector<128xf32>
    %24 = vector.multi_reduction <add>, %23, %cst_17 [0] : vector<8x128xf32> to vector<128xf32>
    %25 = vector.shape_cast %24 : vector<128xf32> to vector<1x128xf32>
    %cst_18 = arith.constant 1.250000e-01 : f32
    %26 = vector.broadcast %cst_18 : f32 to vector<1x128xf32>
    %27 = arith.mulf %25, %26 : vector<1x128xf32>
    %28 = arith.mulf %23, %23 : vector<8x128xf32>
    %cst_19 = arith.constant dense<0.000000e+00> : vector<128xf32>
    %29 = vector.multi_reduction <add>, %28, %cst_19 [0] : vector<8x128xf32> to vector<128xf32>
    %30 = vector.shape_cast %29 : vector<128xf32> to vector<1x128xf32>
    %cst_20 = arith.constant 1.250000e-01 : f32
    %31 = vector.broadcast %cst_20 : f32 to vector<1x128xf32>
    %32 = arith.mulf %30, %31 : vector<1x128xf32>
    %33 = arith.mulf %27, %27 : vector<1x128xf32>
    %34 = arith.subf %32, %33 : vector<1x128xf32>
    %cst_21 = arith.constant 0.000000e+00 : f32
    %35 = vector.broadcast %cst_21 : f32 to vector<1x128xf32>
    %36 = arith.maximumf %34, %35 : vector<1x128xf32>
    %37 = vector.broadcast %27 : vector<1x128xf32> to vector<8x128xf32>
    %38 = arith.subf %17, %37 : vector<8x128xf32>
    %cst_22 = arith.constant 9.99999974E-6 : f32
    %39 = vector.broadcast %cst_22 : f32 to vector<1x128xf32>
    %40 = arith.addf %36, %39 : vector<1x128xf32>
    %41 = math.rsqrt %40 : vector<1x128xf32>
    %42 = vector.broadcast %41 : vector<1x128xf32> to vector<8x128xf32>
    %43 = arith.mulf %38, %42 : vector<8x128xf32>
    %44 = vector.broadcast %18 : vector<1x128xf32> to vector<8x128xf32>
    %45 = arith.mulf %43, %44 : vector<8x128xf32>
    %46 = vector.broadcast %19 : vector<1x128xf32> to vector<8x128xf32>
    %47 = arith.addf %45, %46 : vector<8x128xf32>
    %c0_23 = arith.constant 0 : index
    %c0_24 = arith.constant 0 : index
    %48 = vector.load %arg7[%c0_23, %c0_24] : memref<128x128xf32, #tpu.memory_space<vmem>>, vector<128x128xf32>
    %c0_25 = arith.constant 0 : index
    %c0_26 = arith.constant 0 : index
    %49 = vector.load %arg8[%c0_25, %c0_26] : memref<1x128xf32, #tpu.memory_space<vmem>>, vector<1x128xf32>
    %cst_27 = arith.constant dense<0.000000e+00> : vector<8x128xf32>
    %50 = tpu.matmul %47, %48, %cst_27 {dimension_numbers = #tpu.dot_dimension_numbers<[1], [0], [0], [1], [0, 0, 1, 1], [], []>} : vector<8x128xf32>, vector<128x128xf32>, vector<8x128xf32> -> vector<8x128xf32>
    %51 = vector.broadcast %49 : vector<1x128xf32> to vector<8x128xf32>
    %52 = arith.addf %50, %51 : vector<8x128xf32>
    %cst_28 = arith.constant 0.000000e+00 : f32
    %53 = vector.broadcast %cst_28 : f32 to vector<8x128xf32>
    %54 = arith.maximumf %52, %53 : vector<8x128xf32>
    %c0_29 = arith.constant 0 : index
    %c0_30 = arith.constant 0 : index
    %55 = vector.load %arg9[%c0_29, %c0_30] : memref<1x128xf32, #tpu.memory_space<vmem>>, vector<1x128xf32>
    %c0_31 = arith.constant 0 : index
    %c0_32 = arith.constant 0 : index
    %56 = vector.load %arg10[%c0_31, %c0_32] : memref<1x128xf32, #tpu.memory_space<vmem>>, vector<1x128xf32>
    %cst_33 = arith.constant 0.000000e+00 : f32
    %57 = vector.shape_cast %3 : vector<8x1xi1> to vector<8x1xi1>
    %58 = vector.broadcast %57 : vector<8x1xi1> to vector<8x128xi1>
    %59 = vector.broadcast %cst_33 : f32 to vector<8x128xf32>
    %60 = arith.select %58, %54, %59 : vector<8x128xi1>, vector<8x128xf32>
    %cst_34 = arith.constant dense<0.000000e+00> : vector<128xf32>
    %61 = vector.multi_reduction <add>, %60, %cst_34 [0] : vector<8x128xf32> to vector<128xf32>
    %62 = vector.shape_cast %61 : vector<128xf32> to vector<1x128xf32>
    %cst_35 = arith.constant 1.250000e-01 : f32
    %63 = vector.broadcast %cst_35 : f32 to vector<1x128xf32>
    %64 = arith.mulf %62, %63 : vector<1x128xf32>
    %65 = arith.mulf %60, %60 : vector<8x128xf32>
    %cst_36 = arith.constant dense<0.000000e+00> : vector<128xf32>
    %66 = vector.multi_reduction <add>, %65, %cst_36 [0] : vector<8x128xf32> to vector<128xf32>
    %67 = vector.shape_cast %66 : vector<128xf32> to vector<1x128xf32>
    %cst_37 = arith.constant 1.250000e-01 : f32
    %68 = vector.broadcast %cst_37 : f32 to vector<1x128xf32>
    %69 = arith.mulf %67, %68 : vector<1x128xf32>
    %70 = arith.mulf %64, %64 : vector<1x128xf32>
    %71 = arith.subf %69, %70 : vector<1x128xf32>
    %cst_38 = arith.constant 0.000000e+00 : f32
    %72 = vector.broadcast %cst_38 : f32 to vector<1x128xf32>
    %73 = arith.maximumf %71, %72 : vector<1x128xf32>
    %74 = vector.broadcast %64 : vector<1x128xf32> to vector<8x128xf32>
    %75 = arith.subf %54, %74 : vector<8x128xf32>
    %cst_39 = arith.constant 9.99999974E-6 : f32
    %76 = vector.broadcast %cst_39 : f32 to vector<1x128xf32>
    %77 = arith.addf %73, %76 : vector<1x128xf32>
    %78 = math.rsqrt %77 : vector<1x128xf32>
    %79 = vector.broadcast %78 : vector<1x128xf32> to vector<8x128xf32>
    %80 = arith.mulf %75, %79 : vector<8x128xf32>
    %81 = vector.broadcast %55 : vector<1x128xf32> to vector<8x128xf32>
    %82 = arith.mulf %80, %81 : vector<8x128xf32>
    %83 = vector.broadcast %56 : vector<1x128xf32> to vector<8x128xf32>
    %84 = arith.addf %82, %83 : vector<8x128xf32>
    %85 = tpu.iota {dimensions = array<i32: 1>} : vector<1x128xi32>
    %c8_i32_40 = arith.constant 8 : i32
    %86 = vector.broadcast %c8_i32_40 : i32 to vector<1x128xi32>
    %87 = arith.cmpi slt, %85, %86 : vector<1x128xi32>
    %cst_41 = arith.constant -1.000000e+30 : f32
    %88 = vector.shape_cast %87 : vector<1x128xi1> to vector<1x128xi1>
    %89 = vector.broadcast %88 : vector<1x128xi1> to vector<8x128xi1>
    %90 = vector.broadcast %cst_41 : f32 to vector<8x128xf32>
    %91 = arith.select %89, %84, %90 : vector<8x128xi1>, vector<8x128xf32>
    %cst_42 = arith.constant dense<0xFF800000> : vector<8xf32>
    %92 = vector.multi_reduction <maximumf>, %91, %cst_42 [1] : vector<8x128xf32> to vector<8xf32>
    %93 = vector.shape_cast %92 : vector<8xf32> to vector<8x1xf32>
    %94 = vector.broadcast %93 : vector<8x1xf32> to vector<8x128xf32>
    %95 = arith.subf %91, %94 : vector<8x128xf32>
    %96 = math.exp %95 : vector<8x128xf32>
    %cst_43 = arith.constant dense<0.000000e+00> : vector<8xf32>
    %97 = vector.multi_reduction <add>, %96, %cst_43 [1] : vector<8x128xf32> to vector<8xf32>
    %98 = vector.shape_cast %97 : vector<8xf32> to vector<8x1xf32>
    %99 = vector.broadcast %98 : vector<8x1xf32> to vector<8x128xf32>
    %100 = arith.divf %96, %99 : vector<8x128xf32>
    %c0_44 = arith.constant 0 : index
    %c0_45 = arith.constant 0 : index
    %101 = vector.load %arg11[%c0_44, %c0_45] : memref<8x128xf32, #tpu.memory_space<vmem>>, vector<8x128xf32>
    tpu.vector_store %arg11[%c0_44, %c0_45], %100 {strides = array<i32>} : memref<8x128xf32, #tpu.memory_space<vmem>>, vector<8x128xf32>,
    return
  }
}

</mosaic_0001>

<bundles_post_ra>
// kernel: tpu_custom_call.1
= control target key start
LH: loop header
LB: loop body
LE: loop exit
PB: predicated region body
PF: predicated region fallthrough
CT: control target
= control target key end

     0   :  { %16 = vsyncpa [#allocation3], 0  ;;  %s947_s0 = inlined_call_operand.hbm [shape: f32[8,128], index: 0, kind: input, shape index: {}]   ;;  %s948_s1 = inlined_call_operand.hbm [shape: f32[128,128], index: 1, kind: input, shape index: {}]   ;;  %s949_s2 = inlined_call_operand.vmem [shape: f32[1,128], index: 2, kind: input, shape index: {}]   ;;  %s950_s3 = inlined_call_operand.hbm [shape: f32[128,128], index: 3, kind: input, shape index: {}]   ;;  %s951_s4 = inlined_call_operand.vmem [shape: f32[1,128], index: 4, kind: input, shape index: {}]   ;;  %s952_s5 = inlined_call_operand.vmem [shape: f32[1,128], index: 5, kind: input, shape index: {}]   ;;  %s953_s6 = inlined_call_operand.vmem [shape: f32[1,128], index: 6, kind: input, shape index: {}]   ;;  %s954_s7 = inlined_call_operand.hbm [shape: f32[128,128], index: 7, kind: input, shape index: {}]   ;;  %s955_s8 = inlined_call_operand.vmem [shape: f32[1,128], index: 8, kind: input, shape index: {}]   ;;  %s956_s9 = inlined_call_operand.vmem [shape: f32[1,128], index: 9, kind: input, shape index: {}]   ;;  %s957_s10 = inlined_call_operand.vmem [shape: f32[1,128], index: 10, kind: input, shape index: {}]   ;;  %s958_s11 = inlined_call_operand.hbm [shape: f32[8,128], index: 11, kind: output, shape index: {}]  }
   0x1   :  { %17 = vsyncpa [#allocation6], 0 }
   0x2   :  { %18 = vsyncpa [#allocation9], 0 }
   0x3   :  { %19 = vsyncpa [#allocation4], 0  ;;  %s779_s17 = smov [#allocation5]  }
   0x4   :  { %s35_s18 = sshll.u32 %s779_s17, 4  ;;  %s36_s18 = int_to_ptr.vmem [resolvable:$true] %s35_s18 }
   0x5   :  { %s679_s19 = scalar_lea.vmem %s36_s18, 2048  ;;  %p684_p1 = scmp.lt.s32.totalorder %s36_s18, %s36_s18 }
   0x6   :  { %p680_p0 = scmp.ne.s32.totalorder %s36_s18, %s679_s19  ;;  %p685_p2 = scmp.lt.s32.totalorder %s679_s19, %s679_s19 }
   0x8   :  { %p686_p3 = por %p685_p2, %p684_p1 }
   0xa   :  { %p687_p4 = pnand %p686_p3, %p680_p0 }
   0xc   :  { %690 = shalt.err (!%p687_p4)
}
   0xd   :  { %s780_s20 = smov 128   ;;  %s781_s21 = smov 8  }
   0xe   :  { %41 = dma.hbm_to_vmem [thread:$0]  %s948_s1, 2048, %s36_s18, [#allocation6], %s780_s20, %s780_s20, %s781_s21  }
   0xf   :  { %s782_s24 = smov [#allocation2]   ;;  %s783_s26 = smov [#allocation7]  }
  0x10   :  { %s26_s25 = sshll.u32 %s782_s24, 4  ;;  %s49_s27 = sshll.u32 %s783_s26, 4  ;;  %s27_s25 = int_to_ptr.vmem [resolvable:$true] %s26_s25  ;;  %s50_s27 = int_to_ptr.vmem [resolvable:$true] %s49_s27 }
  0x11   :  { %s699_s28 = scalar_lea.vmem %s27_s25, 128  ;;  %p704_p6 = scmp.lt.s32.totalorder %s27_s25, %s27_s25 }
  0x12   :  { %p700_p5 = scmp.ne.s32.totalorder %s27_s25, %s699_s28  ;;  %p705_p7 = scmp.lt.s32.totalorder %s699_s28, %s699_s28 }
  0x14   :  { %p706_p8 = por %p705_p7, %p704_p6 }
  0x16   :  { %p707_p9 = pnand %p706_p8, %p700_p5 }
  0x18   :  { %710 = shalt.err (!%p707_p9)
}
  0x19   :  { %29 = dma.hbm_to_vmem [thread:$0]  %s947_s0, 128, %s27_s25, [#allocation3]  }
  0x1a   :  { %s719_s12 = scalar_lea.vmem %s50_s27, 2048  ;;  %p724_p11 = scmp.lt.s32.totalorder %s50_s27, %s50_s27 }
  0x1b   :  { %p720_p10 = scmp.ne.s32.totalorder %s50_s27, %s719_s12  ;;  %p725_p12 = scmp.lt.s32.totalorder %s719_s12, %s719_s12 }
  0x1d   :  { %p726_p13 = por %p725_p12, %p724_p11 }
  0x1f   :  { %p727_p0 = pnand %p726_p13, %p720_p10 }
  0x21   :  { %730 = shalt.err (!%p727_p0)
}
  0x22   :  { %55 = dma.hbm_to_vmem [thread:$0]  %s950_s3, 2048, %s50_s27, [#allocation6], %s780_s20, %s780_s20, %s781_s21  }
  0x23   :  { %s784_s14 = smov [#allocation8]  }
  0x24   :  { %s67_s15 = sshll.u32 %s784_s14, 4  ;;  %s68_s15 = int_to_ptr.vmem [resolvable:$true] %s67_s15 }
  0x25   :  { %s739_s16 = scalar_lea.vmem %s68_s15, 2048  ;;  %p744_p2 = scmp.lt.s32.totalorder %s68_s15, %s68_s15 }
  0x26   :  { %p740_p1 = scmp.ne.s32.totalorder %s68_s15, %s739_s16  ;;  %p745_p3 = scmp.lt.s32.totalorder %s739_s16, %s739_s16 }
  0x28   :  { %p746_p4 = por %p745_p3, %p744_p2 }
  0x2a   :  { %p747_p5 = pnand %p746_p4, %p740_p1 }
  0x2c   :  { %750 = shalt.err (!%p747_p5)
}
  0x2d   :  { %73 = dma.hbm_to_vmem [thread:$0]  %s954_s7, 2048, %s68_s15, [#allocation9], %s780_s20, %s780_s20, %s781_s21  }
  0x2e   :  { %771 = dma.done.wait [#allocation3], 128  }
  0x2f   :  { %772 = vsyncadd [#allocation3], 4294967168 }
  0x30   :  { %773 = dma.done.wait [#allocation6], 4096  }
  0x31   :  { %774 = vsyncadd [#allocation6], 4294963200 }
  0x32   :  { %775 = dma.done.wait [#allocation9], 2048  }
  0x33   :  { %776 = vsyncadd [#allocation9], 4294965248  ;;  %v785_v0 = vmov 0.0   ;;  %vm786_vm0 = vmmov 0   ;;  %v111_v1 = vld [vmem:[#allocation5 + $0x78] sm:$0xff]  ;;  %v110_v2 = vld [vmem:[#allocation5 + $0x70] sm:$0xff] }
  0x34   :  { %549 = vmatprep.subr.mxu0 %v785_v0  ;;  %581 = vmatprep.mubr.msk.f32.mxu0 %vm786_vm0, %v785_v0  ;;  %v109_v3 = vld [vmem:[#allocation5 + $0x68] sm:$0xff]  ;;  %v108_v4 = vld [vmem:[#allocation5 + $0x60] sm:$0xff]  ;;  %v205_v5 = vld [vmem:[#allocation7 + $0x78] sm:$0xff] }
  0x35   :  { %584 = vmatprep.subr.mxu1 %v785_v0  ;;  %616 = vmatprep.mubr.msk.f32.mxu1 %vm786_vm0, %v785_v0  ;;  %v107_v6 = vld [vmem:[#allocation5 + $0x58] sm:$0xff]  ;;  %v204_v7 = vld [vmem:[#allocation7 + $0x70] sm:$0xff]  ;;  %v203_v8 = vld [vmem:[#allocation7 + $0x68] sm:$0xff] }
  0x36   :  { %550 = vmatpush3.msra.mxu0 %v111_v1  ;;  %585 = vmatpush3.msra.mxu1 %v205_v5  ;;  %v106_v9 = vld [vmem:[#allocation5 + $0x50] sm:$0xff]  ;;  %v202_v10 = vld [vmem:[#allocation7 + $0x60] sm:$0xff]  ;;  %v105_v11 = vld [vmem:[#allocation5 + $0x48] sm:$0xff] }
  0x37   :  { %551 = vmatprep.subr.mxu0 %v785_v0  ;;  %586 = vmatprep.subr.mxu1 %v785_v0  ;;  %v201_v12 = vld [vmem:[#allocation7 + $0x58] sm:$0xff]  ;;  %v104_v13 = vld [vmem:[#allocation5 + $0x40] sm:$0xff]  ;;  %v200_v14 = vld [vmem:[#allocation7 + $0x50] sm:$0xff] }
  0x38   :  { %552 = vmatpush3.msra.mxu0 %v110_v2  ;;  %587 = vmatpush3.msra.mxu1 %v204_v7  ;;  %v103_v15 = vld [vmem:[#allocation5 + $0x38] sm:$0xff]  ;;  %v199_v16 = vld [vmem:[#allocation7 + $0x48] sm:$0xff]  ;;  %v102_v17 = vld [vmem:[#allocation5 + $0x30] sm:$0xff] }
  0x39   :  { %553 = vmatprep.subr.mxu0 %v785_v0  ;;  %588 = vmatprep.subr.mxu1 %v785_v0  ;;  %v198_v18 = vld [vmem:[#allocation7 + $0x40] sm:$0xff]  ;;  %v101_v19 = vld [vmem:[#allocation5 + $0x28] sm:$0xff]  ;;  %v197_v20 = vld [vmem:[#allocation7 + $0x38] sm:$0xff] }
  0x3a   :  { %554 = vmatpush3.msra.mxu0 %v109_v3  ;;  %589 = vmatpush3.msra.mxu1 %v203_v8  ;;  %v100_v21 = vld [vmem:[#allocation5 + $0x20] sm:$0xff]  ;;  %v196_v22 = vld [vmem:[#allocation7 + $0x30] sm:$0xff]  ;;  %v99_v23 = vld [vmem:[#allocation5 + $0x18] sm:$0xff] }
  0x3b   :  { %555 = vmatprep.subr.mxu0 %v785_v0  ;;  %590 = vmatprep.subr.mxu1 %v785_v0  ;;  %v195_v24 = vld [vmem:[#allocation7 + $0x28] sm:$0xff]  ;;  %v98_v25 = vld [vmem:[#allocation5 + $0x10] sm:$0xff]  ;;  %v194_v26 = vld [vmem:[#allocation7 + $0x20] sm:$0xff] }
  0x3c   :  { %556 = vmatpush3.msra.mxu0 %v108_v4  ;;  %591 = vmatpush3.msra.mxu1 %v202_v10  ;;  %v97_v27 = vld [vmem:[#allocation5 + $0x8] sm:$0xff]  ;;  %v193_v28 = vld [vmem:[#allocation7 + $0x18] sm:$0xff]  ;;  %v96_v29 = vld [vmem:[#allocation5] sm:$0xff] }
  0x3d   :  { %557 = vmatprep.subr.mxu0 %v785_v0  ;;  %592 = vmatprep.subr.mxu1 %v785_v0  ;;  %v92_v30 = vld [vmem:[#allocation2] sm:$0xff]  ;;  %v192_v31 = vld [vmem:[#allocation7 + $0x10] sm:$0xff]  ;;  %v191_v32 = vld [vmem:[#allocation7 + $0x8] sm:$0xff] }
  0x3e   :  { %558 = vmatpush3.msra.mxu0 %v107_v6  ;;  %593 = vmatpush3.msra.mxu1 %v201_v12  ;;  %v190_v33 = vld [vmem:[#allocation7] sm:$0xff]  ;;  %v491_v34 = vld [vmem:[%s949_s2] ss:$0 sm:$0xff]  ;;  %v339_v40 = vld [vmem:[#allocation8 + $0x70] sm:$0xff] }
  0x3f   :  { %559 = vmatprep.subr.mxu0 %v785_v0  ;;  %594 = vmatprep.subr.mxu1 %v785_v0  ;;  %v340_v39 = vld [vmem:[#allocation8 + $0x78] sm:$0xff]  ;;  %v338_v41 = vld [vmem:[#allocation8 + $0x68] sm:$0xff]  ;;  %v337_v42 = vld [vmem:[#allocation8 + $0x60] sm:$0xff] }
  0x40   :  { %560 = vmatpush3.msra.mxu0 %v106_v9  ;;  %595 = vmatpush3.msra.mxu1 %v200_v14  ;;  %v336_v43 = vld [vmem:[#allocation8 + $0x58] sm:$0xff]  ;;  %v335_v44 = vld [vmem:[#allocation8 + $0x50] sm:$0xff]  ;;  %v334_v45 = vld [vmem:[#allocation8 + $0x48] sm:$0xff] }
  0x41   :  { %561 = vmatprep.subr.mxu0 %v785_v0  ;;  %596 = vmatprep.subr.mxu1 %v785_v0  ;;  %v333_v46 = vld [vmem:[#allocation8 + $0x40] sm:$0xff]  ;;  %v332_v47 = vld [vmem:[#allocation8 + $0x38] sm:$0xff]  ;;  %v331_v48 = vld [vmem:[#allocation8 + $0x30] sm:$0xff] }
  0x42   :  { %562 = vmatpush3.msra.mxu0 %v105_v11  ;;  %597 = vmatpush3.msra.mxu1 %v199_v16  ;;  %v330_v49 = vld [vmem:[#allocation8 + $0x28] sm:$0xff]  ;;  %v329_v50 = vld [vmem:[#allocation8 + $0x20] sm:$0xff]  ;;  %v328_v51 = vld [vmem:[#allocation8 + $0x18] sm:$0xff] }
  0x43   :  { %563 = vmatprep.subr.mxu0 %v785_v0  ;;  %598 = vmatprep.subr.mxu1 %v785_v0  ;;  %v327_v52 = vld [vmem:[#allocation8 + $0x10] sm:$0xff]  ;;  %v326_v53 = vld [vmem:[#allocation8 + $0x8] sm:$0xff]  ;;  %v325_v54 = vld [vmem:[#allocation8] sm:$0xff] }
  0x44   :  { %564 = vmatpush3.msra.mxu0 %v104_v13  ;;  %599 = vmatpush3.msra.mxu1 %v198_v18  ;;  %v492_v55 = vld [vmem:[%s951_s4] ss:$0 sm:$0xff] }
  0x45   :  { %565 = vmatprep.subr.mxu0 %v785_v0  ;;  %600 = vmatprep.subr.mxu1 %v785_v0 }
  0x46   :  { %566 = vmatpush3.msra.mxu0 %v103_v15  ;;  %601 = vmatpush3.msra.mxu1 %v197_v20 }
  0x47   :  { %567 = vmatprep.subr.mxu0 %v785_v0  ;;  %602 = vmatprep.subr.mxu1 %v785_v0 }
  0x48   :  { %568 = vmatpush3.msra.mxu0 %v102_v17  ;;  %603 = vmatpush3.msra.mxu1 %v196_v22  ;;  %v493_v17 = vld [vmem:[%s952_s5] ss:$0 sm:$0xff] }
  0x49   :  { %569 = vmatprep.subr.mxu0 %v785_v0  ;;  %604 = vmatprep.subr.mxu1 %v785_v0  ;;  %v495_v22 = vld [vmem:[%s955_s8] ss:$0 sm:$0xff] }
  0x4a   :  { %570 = vmatpush3.msra.mxu0 %v101_v19  ;;  %605 = vmatpush3.msra.mxu1 %v195_v24  ;;  %v494_v19 = vld [vmem:[%s953_s6] ss:$0 sm:$0xff] }
  0x4b   :  { %571 = vmatprep.subr.mxu0 %v785_v0  ;;  %606 = vmatprep.subr.mxu1 %v785_v0 }
  0x4c   :  { %572 = vmatpush3.msra.mxu0 %v100_v21  ;;  %607 = vmatpush3.msra.mxu1 %v194_v26 }
  0x4d   :  { %573 = vmatprep.subr.mxu0 %v785_v0  ;;  %608 = vmatprep.subr.mxu1 %v785_v0 }
  0x4e   :  { %574 = vmatpush3.msra.mxu0 %v99_v23  ;;  %609 = vmatpush3.msra.mxu1 %v193_v28 }
  0x4f   :  { %575 = vmatprep.subr.mxu0 %v785_v0  ;;  %610 = vmatprep.subr.mxu1 %v785_v0 }
  0x50   :  { %576 = vmatpush3.msra.mxu0 %v98_v25  ;;  %611 = vmatpush3.msra.mxu1 %v192_v31 }
  0x51   :  { %577 = vmatprep.subr.mxu0 %v785_v0  ;;  %612 = vmatprep.subr.mxu1 %v785_v0 }
  0x52   :  { %578 = vmatpush3.msra.mxu0 %v97_v27  ;;  %613 = vmatpush3.msra.mxu1 %v191_v32 }
  0x53   :  { %579 = vmatprep.subr.mxu0 %v785_v0  ;;  %614 = vmatprep.subr.mxu1 %v785_v0 }
  0x54   :  { %580 = vmatpush3.msra.mxu0 %v96_v29  ;;  %615 = vmatpush3.msra.mxu1 %v190_v33 }
  0x55   :  { %582 = vmatmul.mubr.f32.vlgmr.msra.gmra.mxu0 %v92_v30  ;;  %619 = vmatprep.subr.mxu0 %v785_v0 }
  0x56   :  { %651 = vmatprep.mubr.msk.f32.mxu0 %vm786_vm0, %v785_v0  ;;  %620 = vmatpush3.msra.mxu0 %v340_v39 }
  0x57   :  { %621 = vmatprep.subr.mxu0 %v785_v0 }
  0x58   :  { %622 = vmatpush3.msra.mxu0 %v339_v40 }
  0x59   :  { %623 = vmatprep.subr.mxu0 %v785_v0 }
  0x5a   :  { %624 = vmatpush3.msra.mxu0 %v338_v41 }
  0x5b   :  { %625 = vmatprep.subr.mxu0 %v785_v0 }
  0x5c   :  { %626 = vmatpush3.msra.mxu0 %v337_v42 }
  0x5d   :  { %627 = vmatprep.subr.mxu0 %v785_v0 }
  0x5e   :  { %628 = vmatpush3.msra.mxu0 %v336_v43 }
  0x5f   :  { %629 = vmatprep.subr.mxu0 %v785_v0 }
  0x60   :  { %630 = vmatpush3.msra.mxu0 %v335_v44 }
  0x61   :  { %631 = vmatprep.subr.mxu0 %v785_v0 }
  0x62   :  { %632 = vmatpush3.msra.mxu0 %v334_v45 }
  0x63   :  { %633 = vmatprep.subr.mxu0 %v785_v0 }
  0x64   :  { %634 = vmatpush3.msra.mxu0 %v333_v46  ;;  %v458_v46 = vlaneseq }
  0x65   :  { %635 = vmatprep.subr.mxu0 %v785_v0 }
  0x66   :  { %636 = vmatpush3.msra.mxu0 %v332_v47 }
  0x67   :  { %637 = vmatprep.subr.mxu0 %v785_v0 }
  0x68   :  { %638 = vmatpush3.msra.mxu0 %v331_v48 }
  0x69   :  { %639 = vmatprep.subr.mxu0 %v785_v0 }
  0x6a   :  { %640 = vmatpush3.msra.mxu0 %v330_v49  ;;  %v496_v49 = vld [vmem:[%s956_s9] ss:$0 sm:$0xff]  ;;  %s787_s9 = smov [#allocation10]  }
  0x6b   :  { %641 = vmatprep.subr.mxu0 %v785_v0  ;;  %s480_s25 = sshll.u32 %s787_s9, 4  ;;  %s481_s25 = int_to_ptr.vmem [resolvable:$true] %s480_s25 }
  0x6c   :  { %642 = vmatpush3.msra.mxu0 %v329_v50  ;;  %v459_v50 = vand.u32 127, %v458_v46  ;;  %p756_p7 = scmp.lt.s32.totalorder %s481_s25, %s481_s25 }
  0x6d   :  { %643 = vmatprep.subr.mxu0 %v785_v0 }
  0x6e   :  { %644 = vmatpush3.msra.mxu0 %v328_v51  ;;  %vm460_vm1 = vcmp.lt.s32.totalorder %v459_v50, 8 }
  0x6f   :  { %645 = vmatprep.subr.mxu0 %v785_v0 }
  0x70   :  { %646 = vmatpush3.msra.mxu0 %v327_v52  ;;  %v497_v52 = vld [vmem:[%s957_s10] ss:$0 sm:$0xff]  ;;  %s751_s10 = scalar_lea.vmem %s481_s25, 128 }
  0x71   :  { %647 = vmatprep.subr.mxu0 %v785_v0  ;;  %p752_p6 = scmp.ne.s32.totalorder %s481_s25, %s751_s10  ;;  %p757_p8 = scmp.lt.s32.totalorder %s751_s10, %s751_s10 }
  0x72   :  { %648 = vmatpush3.msra.mxu0 %v326_v53 }
  0x73   :  { %649 = vmatprep.subr.mxu0 %v785_v0  ;;  %p758_p9 = por %p757_p8, %p756_p7 }
  0x74   :  { %650 = vmatpush3.msra.mxu0 %v325_v54 }
  0x75   :  { %p759_p10 = pnand %p758_p9, %p752_p6 }
 0x115   :  { %v185_v35 = vpop.f32.mrf.mxu0 }
 0x116   :  { %v186_v36 = vadd.f32 %v491_v34, %v185_v35 }
 0x117   :  { %v583_v37 = vpop.f32.mrf.mxu0 }
 0x118   :  { %v189_v38 = vmax.f32 %v186_v36, 0.0 }
 0x11a   :  { %617 = vmatmul.mubr.f32.vlgmr.msra.gmra.mxu1 %v189_v38 }
 0x1da   :  { %v279_v56 = vpop.f32.mrf.mxu1 }
 0x1db   :  { %v280_v57 = vadd.f32 %v492_v55, %v279_v56 }
 0x1dc   :  { %v618_v58 = vpop.f32.mrf.mxu1 }
 0x1dd   :  { %v283_v59 = vmax.f32 %v280_v57, 0.0 }
 0x1df   :  { %v289_v60 = vrot.slane %v283_v59, 4  ;;  %v296_v61 = vmul.f32 %v283_v59, %v283_v59 }
 0x1e1   :  { %v290_v62 = vadd.f32 %v289_v60, %v283_v59  ;;  %v297_v63 = vrot.slane %v296_v61, 4 }
 0x1e3   :  { %v291_v1 = vrot.slane %v290_v62, 2  ;;  %v298_v2 = vadd.f32 %v297_v63, %v296_v61 }
 0x1e5   :  { %v292_v3 = vadd.f32 %v291_v1, %v290_v62  ;;  %v299_v4 = vrot.slane %v298_v2, 2 }
 0x1e7   :  { %v293_v5 = vrot.slane %v292_v3, 1  ;;  %v300_v6 = vadd.f32 %v299_v4, %v298_v2 }
 0x1e9   :  { %v294_v0 = vadd.f32 %v293_v5, %v292_v3  ;;  %v301_v7 = vrot.slane %v300_v6, 1 }
 0x1eb   :  { %v295_v8 = vmul.f32 0.125, %v294_v0  ;;  %v302_v9 = vadd.f32 %v301_v7, %v300_v6 }
 0x1ed   :  { %v303_v10 = vmul.f32 0.125, %v302_v9  ;;  %v304_v11 = vmul.f32 %v295_v8, %v295_v8  ;;  %v307_v15 = vsub.f32 %v283_v59, %v295_v8 }
 0x1ef   :  { %v305_v12 = vsub.f32 %v303_v10, %v304_v11 }
 0x1f1   :  { %v306_v13 = vmax.f32 %v305_v12, 0.0 }
 0x1f3   :  { %v308_v14 = vadd.f32 1e-05, %v306_v13 }
 0x1f5   :  { %663 = vrsqrt.f32 %v308_v14 }
 0x202   :  { %v664_v16 = vpop.eup %663 }
 0x203   :  { %v310_v18 = vmul.f32 %v664_v16, %v307_v15 }
 0x205   :  { %v317_v20 = vmul.f32 %v493_v17, %v310_v18 }
 0x207   :  { %v324_v21 = vadd.f32 %v494_v19, %v317_v20 }
 0x209   :  { %652 = vmatmul.mubr.f32.vlgmr.msra.gmra.mxu0 %v324_v21 }
 0x2c9   :  { %v414_v23 = vpop.f32.mrf.mxu0 }
 0x2ca   :  { %v415_v24 = vadd.f32 %v495_v22, %v414_v23 }
 0x2cb   :  { %v653_v25 = vpop.f32.mrf.mxu0 }
 0x2cc   :  { %v418_v26 = vmax.f32 %v415_v24, 0.0 }
 0x2ce   :  { %v422_v27 = vrot.slane %v418_v26, 4  ;;  %v429_v28 = vmul.f32 %v418_v26, %v418_v26 }
 0x2d0   :  { %v423_v29 = vadd.f32 %v422_v27, %v418_v26  ;;  %v430_v30 = vrot.slane %v429_v28, 4 }
 0x2d2   :  { %v424_v31 = vrot.slane %v423_v29, 2  ;;  %v431_v32 = vadd.f32 %v430_v30, %v429_v28 }
 0x2d4   :  { %v425_v33 = vadd.f32 %v424_v31, %v423_v29  ;;  %v432_v34 = vrot.slane %v431_v32, 2 }
 0x2d6   :  { %v433_v35 = vadd.f32 %v432_v34, %v431_v32  ;;  %v426_v36 = vrot.slane %v425_v33, 1 }
 0x2d8   :  { %v434_v37 = vrot.slane %v433_v35, 1  ;;  %v427_v38 = vadd.f32 %v426_v36, %v425_v33 }
 0x2da   :  { %v435_v39 = vadd.f32 %v434_v37, %v433_v35  ;;  %v428_v40 = vmul.f32 0.125, %v427_v38 }
 0x2dc   :  { %v436_v41 = vmul.f32 0.125, %v435_v39  ;;  %v437_v42 = vmul.f32 %v428_v40, %v428_v40  ;;  %v440_v47 = vsub.f32 %v418_v26, %v428_v40 }
 0x2de   :  { %v438_v43 = vsub.f32 %v436_v41, %v437_v42 }
 0x2e0   :  { %v439_v44 = vmax.f32 %v438_v43, 0.0 }
 0x2e2   :  { %v441_v45 = vadd.f32 1e-05, %v439_v44 }
 0x2e4   :  { %665 = vrsqrt.f32 %v441_v45 }
 0x2f1   :  { %v666_v48 = vpop.eup %665 }
 0x2f2   :  { %v443_v51 = vmul.f32 %v666_v48, %v440_v47 }
 0x2f4   :  { %v450_v53 = vmul.f32 %v496_v49, %v443_v51 }
 0x2f6   :  { %v457_v54 = vadd.f32 %v497_v52, %v450_v53 }
 0x2f8   :  { %v463_v55 = vsel %vm460_vm1, %v457_v54, -1e+30 }
 0x2f9   :  { %464 = vmax.xlane.f32.xlu0 %v463_v55 }
 0x382   :  { %v465_v56 = vpop.xlane.xlu0 %464 }
 0x383   :  { %v466_v57 = vsub.f32 %v463_v55, %v465_v56 }
 0x385   :  { %v467_v58 = vmul.f32 1.442695, %v466_v57 }
 0x387   :  { %667 = vpow2.f32 %v467_v58 }
 0x394   :  { %v668_v59 = vpop.eup %667 }
 0x395   :  { %469 = vadd.xlane.f32.xlu0 %v668_v59 }
 0x41e   :  { %v470_v60 = vpop.xlane.xlu0 %469 }
 0x41f   :  { %669 = vrcp.f32 %v470_v60 }
 0x42c   :  { %v670_v61 = vpop.eup %669 }
 0x42d   :  { %v472_v62 = vmul.f32 %v670_v61, %v668_v59 }
 0x42f   :  { %473 = vst [vmem:[#allocation10] sm:$0xff] %v472_v62 }
 0x430   :  { %762 = shalt.err (!%p759_p10)
}
 0x431   :  { %483 = dma.vmem_to_hbm [thread:$0]  %s481_s25, 128, %s958_s11, [#allocation4]  }
 0x432   :  { %777 = dma.done.wait [#allocation4], 128  }
 0x433   :  { %778 = vsyncadd [#allocation4], 4294967168 }
 0x434   :  { %487 = vsyncpa [#allocation3], 1 }
 0x435   :  { %488 = vsyncpa [#allocation6], 1 }
 0x436   :  { %489 = vsyncpa [#allocation9], 1 }
 0x437   :  { %490 = vsyncpa [#allocation4], 1 }

</bundles_post_ra>
